<compile_context>
chip_gen: v6e
topology: v6e:2x2x1
jax: 0.10.0
libtpu: 0.0.40
codegen_flags: <defaults>
</compile_context>

<pallas_src>
import jax
import jax.numpy as jnp
from jax.experimental import pallas as pl
from jax.experimental.pallas import tpu as pltpu


def _round_up(n, m):
    return (n + m - 1) // m * m


def _largest_divisor_tile(n_pad, cap):
    """Largest multiple of 128 that divides n_pad and is <= cap (min 128)."""
    units = n_pad // 128
    cap_units = max(1, cap // 128)
    best = 1
    for d in range(1, min(units, cap_units) + 1):
        if units % d == 0:
            best = d
    return best * 128


def _device_tuning():
    """Per-TPU-generation tile caps and scoped-VMEM budget."""
    kind = ""
    try:
        kind = jax.devices()[0].device_kind.lower()
    except Exception:
        pass
    if "v7" in kind:      # 64 MiB physical VMEM per TC -> leave headroom
        return dict(vmem=48 * 1024 * 1024, bt_cap=256, n_cap=512)
    if "v6" in kind:      # 128 MiB VMEM -> big tiles reach ~85% of HBM roofline
        return dict(vmem=100 * 1024 * 1024, bt_cap=512, n_cap=1024)
    if "v5" in kind:      # 128 MiB VMEM, 128-wide MXU
        return dict(vmem=80 * 1024 * 1024, bt_cap=256, n_cap=512)
    return dict(vmem=64 * 1024 * 1024, bt_cap=256, n_cap=512)


def base_layer_kernel(x_ref, z_ref, u_ref, w_ref, b_ref, o_ref):
    # Two MXU dots (activations cast to compute dtype in-VMEM), f32 accumulate,
    # lane-aligned bias add, single store in the requested output dtype.
    cd = u_ref.dtype
    acc = jnp.dot(x_ref[...].astype(cd), u_ref[...],
                  preferred_element_type=jnp.float32)
    acc = acc + jnp.dot(z_ref[...].astype(cd), w_ref[...],
                        preferred_element_type=jnp.float32)
    o_ref[...] = (acc + b_ref[...]).astype(o_ref.dtype)


def prepare_base_layer_params(U, W, b, *, compute_dtype=jnp.bfloat16):
    """One-time weight prep (pad N to 128, cast). Cache and reuse per layer."""
    in_dim, out_dim = U.shape
    assert W.shape == (out_dim, out_dim)
    assert b.shape == (out_dim,)
    n_pad = _round_up(out_dim, 128)
    u_p = jnp.pad(U, ((0, 0), (0, n_pad - out_dim))).astype(compute_dtype)
    w_p = jnp.pad(W, ((0, 0), (0, n_pad - out_dim))).astype(compute_dtype)
    b_p = jnp.pad(b, (0, n_pad - out_dim)).reshape(1, n_pad).astype(jnp.float32)
    return dict(U=u_p, W=w_p, b=b_p, in_dim=in_dim, out_dim=out_dim,
                N_pad=n_pad, compute_dtype=compute_dtype)


def base_layer_forward(x, z, params, *, out_dtype=None,
                       batch_tile=None, n_tile=None):
    """f(x, z) = x @ U + z @ W + b, tiled Pallas kernel over (batch, out_dim)."""
    in_dim = params["in_dim"]
    out_dim = params["out_dim"]
    n_pad = params["N_pad"]
    u_p, w_p, b_p = params["U"], params["W"], params["b"]
    cdt = params["compute_dtype"]

    batch = x.shape[0]
    assert x.shape == (batch, in_dim)
    assert z.shape == (batch, out_dim)
    out_dtype = out_dtype if out_dtype is not None else x.dtype

    tune = _device_tuning()
    vmem_limit = tune["vmem"]
    bt = _round_up(min(batch_tile or tune["bt_cap"], _round_up(batch, 16)), 16)
    nt = _largest_divisor_tile(n_pad, n_tile or tune["n_cap"])

    act_isz = jnp.dtype(x.dtype).itemsize
    w_isz = jnp.dtype(cdt).itemsize
    out_isz = jnp.dtype(out_dtype).itemsize
    k_total = in_dim + out_dim

    def fits(bt_, nt_):
        vmem = (2 * bt_ * k_total * act_isz      # x + z tiles (double-buffered)
                + 2 * k_total * nt_ * w_isz      # U + W tiles
                + 2 * nt_ * 4                    # bias tile
                + 2 * bt_ * nt_ * out_isz        # output tile
                + bt_ * nt_ * 4)                 # f32 accumulator working set
        return vmem <= int(0.75 * vmem_limit)

    while not fits(bt, nt) and bt > 16:
        bt = max(16, (bt // 2) // 16 * 16)
    while not fits(bt, nt) and nt > 128:
        new_nt = _largest_divisor_tile(n_pad, nt // 2)
        if new_nt == nt:
            break
        nt = new_nt
    # TODO(synk): if in_dim + out_dim is so large that one K block still blows
    # the VMEM budget (esp. v7x), add a K grid axis + f32 scratch accumulator.

    b_total = _round_up(batch, bt)
    num_bt, num_nt = b_total // bt, n_pad // nt

    # Only the batch dim may need padding (K dims use full-dim blocks).
    x_p = jnp.pad(x, ((0, b_total - batch), (0, 0)))
    z_p = jnp.pad(z, ((0, b_total - batch), (0, 0)))

    # Traffic-aware loop order: stream the dominant operand exactly once.
    act_bytes = b_total * k_total * act_isz
    wgt_bytes = k_total * n_pad * w_isz
    batch_major = (act_bytes + num_bt * wgt_bytes) <= (wgt_bytes + num_nt * act_bytes)

    if batch_major:
        grid = (num_bt, num_nt)
        bmap = lambda i, j: (i, 0)   # activations: re-fetched once per batch tile
        wmap = lambda i, j: (0, j)   # weights: re-streamed per batch tile
        omap = lambda i, j: (i, j)
    else:
        grid = (num_nt, num_bt)
        bmap = lambda j, i: (i, 0)   # activations: re-streamed per N tile
        wmap = lambda j, i: (0, j)   # weights: fetched once per N tile
        omap = lambda j, i: (i, j)

    cost = pl.CostEstimate(
        flops=2 * b_total * k_total * n_pad,
        transcendentals=0,
        bytes_accessed=act_bytes + wgt_bytes + n_pad * 4 + b_total * n_pad * out_isz,
    )

    out = pl.pallas_call(
        base_layer_kernel,
        out_shape=jax.ShapeDtypeStruct((b_total, n_pad), out_dtype),
        grid=grid,
        in_specs=[
            pl.BlockSpec((bt, in_dim), bmap),    # x batch tile (full K, no pad)
            pl.BlockSpec((bt, out_dim), bmap),   # z batch tile (full K, no pad)
            pl.BlockSpec((in_dim, nt), wmap),    # U N tile
            pl.BlockSpec((out_dim, nt), wmap),   # W N tile
            pl.BlockSpec((1, nt), wmap),         # bias N tile
        ],
        out_specs=pl.BlockSpec((bt, nt), omap),
        compiler_params=pltpu.CompilerParams(
            # Only the outer (once-streamed-operand) axis is megacore-parallel,
            # so the duplicated HBM stream across TCs is the cheap one.
            dimension_semantics=("parallel", "arbitrary"),
            vmem_limit_bytes=vmem_limit,
        ),
        cost_estimate=cost,
    )(x_p, z_p, u_p, w_p, b_p)

    if b_total == batch and n_pad == out_dim:
        return out
    return out[:batch, :out_dim]


if __name__ == "__main__":
    # Small shapes consistent with the module's config {'in_dim', 'out_dim'}.
    batch, in_dim, out_dim = 256, 32, 32

    key = jax.random.PRNGKey(0)
    kx, kz, ku, kw, kb = jax.random.split(key, 5)

    x = jax.random.normal(kx, (batch, in_dim), dtype=jnp.float32)
    z = jax.random.normal(kz, (batch, out_dim), dtype=jnp.float32)

    # Deterministic parameter init (fan-in scaled, like nn.Linear default scale).
    U = jax.random.normal(ku, (in_dim, out_dim), dtype=jnp.float32) / jnp.sqrt(in_dim)
    W = jax.random.normal(kw, (out_dim, out_dim), dtype=jnp.float32) / jnp.sqrt(out_dim)
    b = jax.random.normal(kb, (out_dim,), dtype=jnp.float32) * 0.01

    # Weight prep is hoisted & cached: done ONCE, reused across solver iterations.
    params = prepare_base_layer_params(U, W, b)

    out = base_layer_forward(x, z, params)
    out = jax.block_until_ready(out)
    assert out.shape == (batch, out_dim)

    # Exact-path reference: same bf16 quantization of inputs, f32 accumulation.
    f32, bf = jnp.float32, jnp.bfloat16
    ref_q = (x.astype(bf).astype(f32) @ U.astype(bf).astype(f32)
             + z.astype(bf).astype(f32) @ W.astype(bf).astype(f32)
             + b[None, :])
    assert jnp.allclose(out, ref_q, atol=2e-3, rtol=2e-3), "mismatch vs bf16-path reference"

    # Loose check vs pure-f32 math (bf16 input quantization error only).
    ref_f32 = x @ U + z @ W + b[None, :]
    assert jnp.allclose(out, ref_f32, atol=1e-1, rtol=1e-1), "mismatch vs f32 reference"

    print("KERNEL_OK")
</pallas_src>

<mosaic_0001>
module attributes {stable_mosaic.version = 11 : i64} {
  func.func @base_layer_kernel(%arg0: i32, %arg1: i32, %arg2: memref<256x32xf32, #tpu.memory_space<vmem>>, %arg3: memref<256x32xf32, #tpu.memory_space<vmem>>, %arg4: memref<32x128xbf16, #tpu.memory_space<vmem>>, %arg5: memref<32x128xbf16, #tpu.memory_space<vmem>>, %arg6: memref<1x128xf32, #tpu.memory_space<vmem>>, %arg7: memref<256x128xf32, #tpu.memory_space<vmem>>) attributes {dimension_semantics = [#tpu.dimension_semantics<parallel>, #tpu.dimension_semantics<arbitrary>], iteration_bounds = array<i64: 1, 1>, scalar_prefetch = 0 : i64, scratch_operands = 0 : i64, tpu.core_type = #tpu.core_type<tc>, window_params = [{transform_indices = @transform_0, window_bounds = array<i64: 256, 32>}, {transform_indices = @transform_1, window_bounds = array<i64: 256, 32>}, {transform_indices = @transform_2, window_bounds = array<i64: 32, 128>}, {transform_indices = @transform_3, window_bounds = array<i64: 32, 128>}, {transform_indices = @transform_4, window_bounds = array<i64: 1, 128>}, {transform_indices = @transform_5, window_bounds = array<i64: 256, 128>}]} {
    %c0 = arith.constant 0 : index
    %c0_0 = arith.constant 0 : index
    %0 = vector.load %arg2[%c0, %c0_0] : memref<256x32xf32, #tpu.memory_space<vmem>>, vector<256x32xf32>
    %1 = arith.truncf %0 : vector<256x32xf32> to vector<256x32xbf16>
    %c0_1 = arith.constant 0 : index
    %c0_2 = arith.constant 0 : index
    %2 = vector.load %arg4[%c0_1, %c0_2] : memref<32x128xbf16, #tpu.memory_space<vmem>>, vector<32x128xbf16>
    %cst = arith.constant dense<0.000000e+00> : vector<256x128xf32>
    %3 = tpu.matmul %1, %2, %cst {dimension_numbers = #tpu.dot_dimension_numbers<[1], [0], [0], [1], [0, 0, 1, 1], [], []>} : vector<256x32xbf16>, vector<32x128xbf16>, vector<256x128xf32> -> vector<256x128xf32>
    %c0_3 = arith.constant 0 : index
    %c0_4 = arith.constant 0 : index
    %4 = vector.load %arg3[%c0_3, %c0_4] : memref<256x32xf32, #tpu.memory_space<vmem>>, vector<256x32xf32>
    %5 = arith.truncf %4 : vector<256x32xf32> to vector<256x32xbf16>
    %c0_5 = arith.constant 0 : index
    %c0_6 = arith.constant 0 : index
    %6 = vector.load %arg5[%c0_5, %c0_6] : memref<32x128xbf16, #tpu.memory_space<vmem>>, vector<32x128xbf16>
    %cst_7 = arith.constant dense<0.000000e+00> : vector<256x128xf32>
    %7 = tpu.matmul %5, %6, %cst_7 {dimension_numbers = #tpu.dot_dimension_numbers<[1], [0], [0], [1], [0, 0, 1, 1], [], []>} : vector<256x32xbf16>, vector<32x128xbf16>, vector<256x128xf32> -> vector<256x128xf32>
    %8 = arith.addf %3, %7 : vector<256x128xf32>
    %c0_8 = arith.constant 0 : index
    %c0_9 = arith.constant 0 : index
    %9 = vector.load %arg6[%c0_8, %c0_9] : memref<1x128xf32, #tpu.memory_space<vmem>>, vector<1x128xf32>
    %10 = vector.broadcast %9 : vector<1x128xf32> to vector<256x128xf32>
    %11 = arith.addf %8, %10 : vector<256x128xf32>
    %c0_10 = arith.constant 0 : index
    %c0_11 = arith.constant 0 : index
    %12 = vector.load %arg7[%c0_10, %c0_11] : memref<256x128xf32, #tpu.memory_space<vmem>>, vector<256x128xf32>
    tpu.vector_store %arg7[%c0_10, %c0_11], %11 {strides = array<i32>} : memref<256x128xf32, #tpu.memory_space<vmem>>, vector<256x128xf32>,
    return
  }
  func.func @transform_0(%arg0: i32, %arg1: i32) -> (i32, i32) {
    %c0_i32 = arith.constant 0 : i32
    %c0_i32_0 = arith.constant 0 : i32
    return %arg0, %c0_i32 : i32, i32
  }
  func.func @transform_1(%arg0: i32, %arg1: i32) -> (i32, i32) {
    %c0_i32 = arith.constant 0 : i32
    %c0_i32_0 = arith.constant 0 : i32
    return %arg0, %c0_i32 : i32, i32
  }
  func.func @transform_2(%arg0: i32, %arg1: i32) -> (i32, i32) {
    %c0_i32 = arith.constant 0 : i32
    %c0_i32_0 = arith.constant 0 : i32
    return %c0_i32, %arg1 : i32, i32
  }
  func.func @transform_3(%arg0: i32, %arg1: i32) -> (i32, i32) {
    %c0_i32 = arith.constant 0 : i32
    %c0_i32_0 = arith.constant 0 : i32
    return %c0_i32, %arg1 : i32, i32
  }
  func.func @transform_4(%arg0: i32, %arg1: i32) -> (i32, i32) {
    %c0_i32 = arith.constant 0 : i32
    %c0_i32_0 = arith.constant 0 : i32
    return %c0_i32, %arg1 : i32, i32
  }
  func.func @transform_5(%arg0: i32, %arg1: i32) -> (i32, i32) {
    %c0_i32 = arith.constant 0 : i32
    return %arg0, %arg1 : i32, i32
  }
}

</mosaic_0001>

<bundles_post_ra>
// kernel: tpu_custom_call.1
= control target key start
LH: loop header
LB: loop body
LE: loop exit
PB: predicated region body
PF: predicated region fallthrough
CT: control target
= control target key end

     0   :  { %vm138_vm0 = vcmask 261120   ;;  %s1139_s0 = inlined_call_operand.vmem [shape: f32[256,32], index: 0, kind: input, shape index: {}]   ;;  %s1140_s1 = inlined_call_operand.vmem [shape: f32[256,32], index: 1, kind: input, shape index: {}]   ;;  %s1141_s2 = inlined_call_operand.vmem [shape: bf16[32,128], index: 2, kind: input, shape index: {}]   ;;  %s1142_s3 = inlined_call_operand.vmem [shape: bf16[32,128], index: 3, kind: input, shape index: {}]   ;;  %s1143_s4 = inlined_call_operand.vmem [shape: f32[1,128], index: 4, kind: input, shape index: {}]   ;;  %s1144_s5 = inlined_call_operand.hbm [shape: f32[256,128], index: 5, kind: output, shape index: {}]  }
   0x1   :  { %v804_v0 = vld [vmem:[%s1142_s3 + $0x8] sm:$0xff]   ;;  %v806_v2 = vld [vmem:[%s1142_s3] sm:$0xff]   ;;  %v76_v9 = vld [vmem:[%s1140_s1 + $0x10] sm:$0xff] }
   0x2   :  { %v805_v1 = vld [vmem:[%s1141_s2 + $0x8] sm:$0xff]   ;;  %729 = vmatprep.subr.bf16.mxu0 %v804_v0  ;;  %v807_v3 = vld [vmem:[%s1141_s2] sm:$0xff]   ;;  %v77_v10 = vld [vmem:[%s1140_s1 + $0x18] sm:$0xff] }
   0x3   :  { %765 = vmatprep.subr.bf16.mxu1 %v805_v1  ;;  %730 = vmatpush3.bf16.msra.mxu0 %v804_v0  ;;  %v74_v4 = vld [vmem:[%s1140_s1] sm:$0xff]  ;;  %v75_v5 = vld [vmem:[%s1140_s1 + $0x8] sm:$0xff]  ;;  %v107_v12 = vpack.c.bf16 %v77_v10, %v76_v9  ;;  %v24_v13 = vld [vmem:[%s1139_s0 + $0x10] sm:$0xff] }
   0x4   :  { %766 = vmatpush3.bf16.msra.mxu1 %v805_v1  ;;  %731 = vmatprep.subr.bf16.mxu0 %v806_v2  ;;  %v22_v6 = vld [vmem:[%s1139_s0] sm:$0xff]  ;;  %v106_v7 = vpack.c.bf16 %v75_v5, %v74_v4  ;;  %v23_v8 = vld [vmem:[%s1139_s0 + $0x8] sm:$0xff]  ;;  %v25_v14 = vld [vmem:[%s1139_s0 + $0x18] sm:$0xff] }
   0x5   :  { %767 = vmatprep.subr.bf16.mxu1 %v807_v3  ;;  %v54_v11 = vpack.c.bf16 %v23_v8, %v22_v6  ;;  %v78_v15 = vld [vmem:[%s1140_s1 + $0x20] sm:$0xff]  ;;  %v55_v16 = vpack.c.bf16 %v25_v14, %v24_v13  ;;  %v79_v17 = vld [vmem:[%s1140_s1 + $0x28] sm:$0xff]  ;;  %v80_v22 = vld [vmem:[%s1140_s1 + $0x30] sm:$0xff] }
   0x6   :  { %733 = vmatprep.mubr.msk.bf16.mxu0 %vm138_vm0, %v106_v7  ;;  %v26_v18 = vld [vmem:[%s1139_s0 + $0x20] sm:$0xff]  ;;  %v27_v19 = vld [vmem:[%s1139_s0 + $0x28] sm:$0xff]  ;;  %v108_v20 = vpack.c.bf16 %v79_v17, %v78_v15  ;;  %v81_v23 = vld [vmem:[%s1140_s1 + $0x38] sm:$0xff] }
   0x7   :  { %732 = vmatpush3.bf16.msra.mxu0 %v806_v2  ;;  %769 = vmatprep.mubr.msk.bf16.mxu1 %vm138_vm0, %v54_v11  ;;  %v56_v21 = vpack.c.bf16 %v27_v19, %v26_v18  ;;  %v28_v24 = vld [vmem:[%s1139_s0 + $0x30] sm:$0xff]  ;;  %v29_v25 = vld [vmem:[%s1139_s0 + $0x38] sm:$0xff]  ;;  %v82_v26 = vld [vmem:[%s1140_s1 + $0x40] sm:$0xff]  ;;  %v109_v30 = vpack.c.bf16 %v81_v23, %v80_v22 }
   0x8   :  { %768 = vmatpush3.bf16.msra.mxu1 %v807_v3  ;;  %v83_v27 = vld [vmem:[%s1140_s1 + $0x48] sm:$0xff]  ;;  %v30_v28 = vld [vmem:[%s1139_s0 + $0x40] sm:$0xff]  ;;  %v57_v31 = vpack.c.bf16 %v29_v25, %v28_v24  ;;  %v84_v34 = vld [vmem:[%s1140_s1 + $0x50] sm:$0xff] }
   0x9   :  { %v31_v29 = vld [vmem:[%s1139_s0 + $0x48] sm:$0xff]  ;;  %v110_v32 = vpack.c.bf16 %v83_v27, %v82_v26  ;;  %v85_v35 = vld [vmem:[%s1140_s1 + $0x58] sm:$0xff]  ;;  %v32_v36 = vld [vmem:[%s1139_s0 + $0x50] sm:$0xff] }
   0xa   :  { %734 = vmatmul.mubr.msk.bf16.vlgmr.msra.gmra.mxu0 %vm138_vm0, %v107_v12  ;;  %v58_v33 = vpack.c.bf16 %v31_v29, %v30_v28  ;;  %v33_v37 = vld [vmem:[%s1139_s0 + $0x58] sm:$0xff]  ;;  %v86_v38 = vld [vmem:[%s1140_s1 + $0x60] sm:$0xff]  ;;  %v87_v39 = vld [vmem:[%s1140_s1 + $0x68] sm:$0xff]  ;;  %v111_v42 = vpack.c.bf16 %v85_v35, %v84_v34 }
   0xb   :  { %770 = vmatmul.mubr.msk.bf16.vlgmr.msra.gmra.mxu1 %vm138_vm0, %v55_v16  ;;  %737 = vmatprep.mubr.msk.bf16.mxu0 %vm138_vm0, %v108_v20  ;;  %v34_v40 = vld [vmem:[%s1139_s0 + $0x60] sm:$0xff]  ;;  %v35_v41 = vld [vmem:[%s1139_s0 + $0x68] sm:$0xff]  ;;  %v59_v43 = vpack.c.bf16 %v33_v37, %v32_v36  ;;  %v112_v44 = vpack.c.bf16 %v87_v39, %v86_v38 }
   0xc   :  { %773 = vmatprep.mubr.msk.bf16.mxu1 %vm138_vm0, %v56_v21  ;;  %v60_v45 = vpack.c.bf16 %v35_v41, %v34_v40 }
  0x12   :  { %738 = vmatmul.mubr.msk.bf16.gmra.mxu0 %vm138_vm0, %v109_v30 }
  0x13   :  { %774 = vmatmul.mubr.msk.bf16.gmra.mxu1 %vm138_vm0, %v57_v31  ;;  %741 = vmatprep.mubr.msk.bf16.mxu0 %vm138_vm0, %v110_v32 }
  0x14   :  { %777 = vmatprep.mubr.msk.bf16.mxu1 %vm138_vm0, %v58_v33 }
  0x15   :  { %10 = vsyncpa [#allocation3], 0  ;;  %v88_v46 = vld [vmem:[%s1140_s1 + $0x70] sm:$0xff]  ;;  %v89_v47 = vld [vmem:[%s1140_s1 + $0x78] sm:$0xff] }
  0x16   :  { %v36_v48 = vld [vmem:[%s1139_s0 + $0x70] sm:$0xff]  ;;  %v37_v49 = vld [vmem:[%s1139_s0 + $0x78] sm:$0xff]  ;;  %v90_v50 = vld [vmem:[%s1140_s1 + $0x80] sm:$0xff]  ;;  %v113_v54 = vpack.c.bf16 %v89_v47, %v88_v46 }
  0x17   :  { %v91_v51 = vld [vmem:[%s1140_s1 + $0x88] sm:$0xff]  ;;  %v38_v52 = vld [vmem:[%s1139_s0 + $0x80] sm:$0xff]  ;;  %v61_v55 = vpack.c.bf16 %v37_v49, %v36_v48  ;;  %v92_v58 = vld [vmem:[%s1140_s1 + $0x90] sm:$0xff] }
  0x18   :  { %v39_v53 = vld [vmem:[%s1139_s0 + $0x88] sm:$0xff]  ;;  %v114_v56 = vpack.c.bf16 %v91_v51, %v90_v50  ;;  %v93_v59 = vld [vmem:[%s1140_s1 + $0x98] sm:$0xff]  ;;  %v40_v60 = vld [vmem:[%s1139_s0 + $0x90] sm:$0xff] }
  0x19   :  { %v62_v57 = vpack.c.bf16 %v39_v53, %v38_v52  ;;  %v41_v61 = vld [vmem:[%s1139_s0 + $0x98] sm:$0xff]  ;;  %v94_v62 = vld [vmem:[%s1140_s1 + $0xa0] sm:$0xff]  ;;  %v95_v63 = vld [vmem:[%s1140_s1 + $0xa8] sm:$0xff]  ;;  %v115_v2 = vpack.c.bf16 %v93_v59, %v92_v58 }
  0x1a   :  { %742 = vmatmul.mubr.msk.bf16.gmra.mxu0 %vm138_vm0, %v111_v42  ;;  %v42_v0 = vld [vmem:[%s1139_s0 + $0xa0] sm:$0xff]  ;;  %v43_v1 = vld [vmem:[%s1139_s0 + $0xa8] sm:$0xff]  ;;  %v63_v3 = vpack.c.bf16 %v41_v61, %v40_v60  ;;  %v116_v4 = vpack.c.bf16 %v95_v63, %v94_v62  ;;  %v96_v6 = vld [vmem:[%s1140_s1 + $0xb0] sm:$0xff] }
  0x1b   :  { %778 = vmatmul.mubr.msk.bf16.gmra.mxu1 %vm138_vm0, %v59_v43  ;;  %745 = vmatprep.mubr.msk.bf16.mxu0 %vm138_vm0, %v112_v44  ;;  %v64_v5 = vpack.c.bf16 %v43_v1, %v42_v0  ;;  %v97_v7 = vld [vmem:[%s1140_s1 + $0xb8] sm:$0xff]  ;;  %v44_v8 = vld [vmem:[%s1139_s0 + $0xb0] sm:$0xff]  ;;  %v98_v10 = vld [vmem:[%s1140_s1 + $0xc0] sm:$0xff] }
  0x1c   :  { %781 = vmatprep.mubr.msk.bf16.mxu1 %vm138_vm0, %v60_v45  ;;  %v45_v9 = vld [vmem:[%s1139_s0 + $0xb8] sm:$0xff]  ;;  %v99_v11 = vld [vmem:[%s1140_s1 + $0xc8] sm:$0xff]  ;;  %v46_v12 = vld [vmem:[%s1139_s0 + $0xc0] sm:$0xff]  ;;  %v117_v14 = vpack.c.bf16 %v97_v7, %v96_v6 }
  0x1d   :  { %v47_v13 = vld [vmem:[%s1139_s0 + $0xc8] sm:$0xff]  ;;  %v65_v15 = vpack.c.bf16 %v45_v9, %v44_v8  ;;  %v118_v16 = vpack.c.bf16 %v99_v11, %v98_v10  ;;  %v100_v18 = vld [vmem:[%s1140_s1 + $0xd0] sm:$0xff]  ;;  %v101_v19 = vld [vmem:[%s1140_s1 + $0xd8] sm:$0xff] }
  0x1e   :  { %v66_v17 = vpack.c.bf16 %v47_v13, %v46_v12  ;;  %v48_v20 = vld [vmem:[%s1139_s0 + $0xd0] sm:$0xff]  ;;  %v49_v21 = vld [vmem:[%s1139_s0 + $0xd8] sm:$0xff]  ;;  %v102_v22 = vld [vmem:[%s1140_s1 + $0xe0] sm:$0xff]  ;;  %v119_v26 = vpack.c.bf16 %v101_v19, %v100_v18 }
  0x1f   :  { %v103_v23 = vld [vmem:[%s1140_s1 + $0xe8] sm:$0xff]  ;;  %v50_v24 = vld [vmem:[%s1139_s0 + $0xe0] sm:$0xff]  ;;  %v67_v27 = vpack.c.bf16 %v49_v21, %v48_v20  ;;  %v104_v30 = vld [vmem:[%s1140_s1 + $0xf0] sm:$0xff] }
  0x20   :  { %v51_v25 = vld [vmem:[%s1139_s0 + $0xe8] sm:$0xff]  ;;  %v120_v28 = vpack.c.bf16 %v103_v23, %v102_v22  ;;  %v105_v31 = vld [vmem:[%s1140_s1 + $0xf8] sm:$0xff]  ;;  %v52_v32 = vld [vmem:[%s1139_s0 + $0xf0] sm:$0xff] }
  0x21   :  { %v68_v29 = vpack.c.bf16 %v51_v25, %v50_v24  ;;  %v53_v33 = vld [vmem:[%s1139_s0 + $0xf8] sm:$0xff]  ;;  %v121_v34 = vpack.c.bf16 %v105_v31, %v104_v30  ;;  %v1102_v38 = vld [vmem:[%s1143_s4] ss:$0 sm:$0xff]  ;;  %s830_s0 = smov [#allocation2]  }
  0x22   :  { %746 = vmatmul.mubr.msk.bf16.gmra.mxu0 %vm138_vm0, %v113_v54  ;;  %v69_v35 = vpack.c.bf16 %v53_v33, %v52_v32  ;;  %s645_s4 = sshll.u32 %s830_s0, 4  ;;  %s646_s4 = int_to_ptr.vmem [resolvable:$true] %s645_s4 }
  0x23   :  { %782 = vmatmul.mubr.msk.bf16.gmra.mxu1 %vm138_vm0, %v61_v55  ;;  %749 = vmatprep.mubr.msk.bf16.mxu0 %vm138_vm0, %v114_v56  ;;  %s808_s20 = scalar_lea.vmem %s646_s4, 4096  ;;  %p813_p1 = scmp.lt.s32.totalorder %s646_s4, %s646_s4 }
  0x24   :  { %785 = vmatprep.mubr.msk.bf16.mxu1 %vm138_vm0, %v62_v57  ;;  %p809_p0 = scmp.ne.s32.totalorder %s646_s4, %s808_s20  ;;  %p814_p2 = scmp.lt.s32.totalorder %s808_s20, %s808_s20 }
  0x26   :  { %p815_p3 = por %p814_p2, %p813_p1 }
  0x28   :  { %p816_p4 = pnand %p815_p3, %p809_p0 }
  0x2a   :  { %750 = vmatmul.mubr.msk.bf16.gmra.mxu0 %vm138_vm0, %v115_v2 }
  0x2b   :  { %786 = vmatmul.mubr.msk.bf16.gmra.mxu1 %vm138_vm0, %v63_v3  ;;  %753 = vmatprep.mubr.msk.bf16.mxu0 %vm138_vm0, %v116_v4 }
  0x2c   :  { %789 = vmatprep.mubr.msk.bf16.mxu1 %vm138_vm0, %v64_v5 }
  0x32   :  { %754 = vmatmul.mubr.msk.bf16.gmra.mxu0 %vm138_vm0, %v117_v14 }
  0x33   :  { %790 = vmatmul.mubr.msk.bf16.gmra.mxu1 %vm138_vm0, %v65_v15  ;;  %757 = vmatprep.mubr.msk.bf16.mxu0 %vm138_vm0, %v118_v16 }
  0x34   :  { %793 = vmatprep.mubr.msk.bf16.mxu1 %vm138_vm0, %v66_v17 }
  0x3a   :  { %758 = vmatmul.mubr.msk.bf16.gmra.mxu0 %vm138_vm0, %v119_v26 }
  0x3b   :  { %794 = vmatmul.mubr.msk.bf16.gmra.mxu1 %vm138_vm0, %v67_v27  ;;  %761 = vmatprep.mubr.msk.bf16.mxu0 %vm138_vm0, %v120_v28 }
  0x3c   :  { %797 = vmatprep.mubr.msk.bf16.mxu1 %vm138_vm0, %v68_v29 }
  0x42   :  { %762 = vmatmul.mubr.msk.bf16.gmra.mxu0 %vm138_vm0, %v121_v34 }
  0x43   :  { %798 = vmatmul.mubr.msk.bf16.gmra.mxu1 %vm138_vm0, %v69_v35 }
  0xca   :  { %v735_v36 = vpop.f32.mrf.mxu0 }
  0xcb   :  { %v771_v37 = vpop.f32.mrf.mxu1 }
  0xcc   :  { %v451_v39 = vadd.f32 %v771_v37, %v735_v36  ;;  %v221_v40 = vpop.f32.mrf.mxu0 }
  0xcd   :  { %v442_v41 = vpop.f32.mrf.mxu1 }
  0xce   :  { %v578_v42 = vadd.f32 %v1102_v38, %v451_v39  ;;  %v443_v43 = vadd.f32 %v442_v41, %v221_v40  ;;  %v736_v44 = vpop.f32.mrf.mxu0 }
  0xcf   :  { %v772_v45 = vpop.f32.mrf.mxu1 }
  0xd0   :  { %610 = vst [vmem:[#allocation2 + $0x10] sm:$0xff] %v578_v42  ;;  %v576_v46 = vadd.f32 %v1102_v38, %v443_v43  ;;  %v454_v47 = vadd.f32 %v772_v45, %v736_v44  ;;  %v224_v48 = vpop.f32.mrf.mxu0 }
  0xd1   :  { %v445_v49 = vpop.f32.mrf.mxu1 }
  0xd2   :  { %608 = vst [vmem:[#allocation2] sm:$0xff] %v576_v46  ;;  %v579_v50 = vadd.f32 %v1102_v38, %v454_v47  ;;  %v446_v51 = vadd.f32 %v445_v49, %v224_v48  ;;  %v739_v52 = vpop.f32.mrf.mxu0 }
  0xd3   :  { %v775_v53 = vpop.f32.mrf.mxu1 }
  0xd4   :  { %611 = vst [vmem:[#allocation2 + $0x18] sm:$0xff] %v579_v50  ;;  %v577_v54 = vadd.f32 %v1102_v38, %v446_v51  ;;  %v467_v55 = vadd.f32 %v775_v53, %v739_v52  ;;  %v237_v56 = vpop.f32.mrf.mxu0 }
  0xd5   :  { %v458_v57 = vpop.f32.mrf.mxu1 }
  0xd6   :  { %609 = vst [vmem:[#allocation2 + $0x8] sm:$0xff] %v577_v54  ;;  %v582_v58 = vadd.f32 %v1102_v38, %v467_v55  ;;  %v459_v59 = vadd.f32 %v458_v57, %v237_v56  ;;  %v740_v60 = vpop.f32.mrf.mxu0 }
  0xd7   :  { %v776_v61 = vpop.f32.mrf.mxu1 }
  0xd8   :  { %614 = vst [vmem:[#allocation2 + $0x30] sm:$0xff] %v582_v58  ;;  %v580_v62 = vadd.f32 %v1102_v38, %v459_v59  ;;  %v470_v63 = vadd.f32 %v776_v61, %v740_v60  ;;  %v240_v0 = vpop.f32.mrf.mxu0 }
  0xd9   :  { %v461_v1 = vpop.f32.mrf.mxu1 }
  0xda   :  { %612 = vst [vmem:[#allocation2 + $0x20] sm:$0xff] %v580_v62  ;;  %v583_v2 = vadd.f32 %v1102_v38, %v470_v63  ;;  %v462_v3 = vadd.f32 %v461_v1, %v240_v0  ;;  %v743_v4 = vpop.f32.mrf.mxu0 }
  0xdb   :  { %v779_v5 = vpop.f32.mrf.mxu1 }
  0xdc   :  { %615 = vst [vmem:[#allocation2 + $0x38] sm:$0xff] %v583_v2  ;;  %v581_v6 = vadd.f32 %v1102_v38, %v462_v3  ;;  %v483_v7 = vadd.f32 %v779_v5, %v743_v4  ;;  %v253_v8 = vpop.f32.mrf.mxu0 }
  0xdd   :  { %v474_v9 = vpop.f32.mrf.mxu1 }
  0xde   :  { %613 = vst [vmem:[#allocation2 + $0x28] sm:$0xff] %v581_v6  ;;  %v586_v10 = vadd.f32 %v1102_v38, %v483_v7  ;;  %v475_v11 = vadd.f32 %v474_v9, %v253_v8  ;;  %v744_v12 = vpop.f32.mrf.mxu0 }
  0xdf   :  { %v780_v13 = vpop.f32.mrf.mxu1 }
  0xe0   :  { %618 = vst [vmem:[#allocation2 + $0x50] sm:$0xff] %v586_v10  ;;  %v584_v14 = vadd.f32 %v1102_v38, %v475_v11  ;;  %v486_v15 = vadd.f32 %v780_v13, %v744_v12  ;;  %v256_v16 = vpop.f32.mrf.mxu0 }
  0xe1   :  { %v477_v17 = vpop.f32.mrf.mxu1 }
  0xe2   :  { %616 = vst [vmem:[#allocation2 + $0x40] sm:$0xff] %v584_v14  ;;  %v587_v18 = vadd.f32 %v1102_v38, %v486_v15  ;;  %v478_v19 = vadd.f32 %v477_v17, %v256_v16  ;;  %v747_v20 = vpop.f32.mrf.mxu0 }
  0xe3   :  { %v783_v21 = vpop.f32.mrf.mxu1 }
  0xe4   :  { %619 = vst [vmem:[#allocation2 + $0x58] sm:$0xff] %v587_v18  ;;  %v585_v22 = vadd.f32 %v1102_v38, %v478_v19  ;;  %v499_v23 = vadd.f32 %v783_v21, %v747_v20  ;;  %v269_v24 = vpop.f32.mrf.mxu0 }
  0xe5   :  { %v490_v25 = vpop.f32.mrf.mxu1 }
  0xe6   :  { %617 = vst [vmem:[#allocation2 + $0x48] sm:$0xff] %v585_v22  ;;  %v590_v26 = vadd.f32 %v1102_v38, %v499_v23  ;;  %v491_v27 = vadd.f32 %v490_v25, %v269_v24  ;;  %v748_v28 = vpop.f32.mrf.mxu0 }
  0xe7   :  { %v784_v29 = vpop.f32.mrf.mxu1 }
  0xe8   :  { %622 = vst [vmem:[#allocation2 + $0x70] sm:$0xff] %v590_v26  ;;  %v588_v30 = vadd.f32 %v1102_v38, %v491_v27  ;;  %v502_v31 = vadd.f32 %v784_v29, %v748_v28  ;;  %v272_v32 = vpop.f32.mrf.mxu0 }
  0xe9   :  { %v493_v33 = vpop.f32.mrf.mxu1 }
  0xea   :  { %620 = vst [vmem:[#allocation2 + $0x60] sm:$0xff] %v588_v30  ;;  %v591_v34 = vadd.f32 %v1102_v38, %v502_v31  ;;  %v494_v35 = vadd.f32 %v493_v33, %v272_v32  ;;  %v751_v36 = vpop.f32.mrf.mxu0 }
  0xeb   :  { %v787_v37 = vpop.f32.mrf.mxu1 }
  0xec   :  { %623 = vst [vmem:[#allocation2 + $0x78] sm:$0xff] %v591_v34  ;;  %v589_v39 = vadd.f32 %v1102_v38, %v494_v35  ;;  %v515_v40 = vadd.f32 %v787_v37, %v751_v36  ;;  %v285_v41 = vpop.f32.mrf.mxu0 }
  0xed   :  { %v506_v42 = vpop.f32.mrf.mxu1 }
  0xee   :  { %621 = vst [vmem:[#allocation2 + $0x68] sm:$0xff] %v589_v39  ;;  %v594_v43 = vadd.f32 %v1102_v38, %v515_v40  ;;  %v507_v44 = vadd.f32 %v506_v42, %v285_v41  ;;  %v752_v45 = vpop.f32.mrf.mxu0 }
  0xef   :  { %v788_v46 = vpop.f32.mrf.mxu1 }
  0xf0   :  { %626 = vst [vmem:[#allocation2 + $0x90] sm:$0xff] %v594_v43  ;;  %v592_v47 = vadd.f32 %v1102_v38, %v507_v44  ;;  %v518_v48 = vadd.f32 %v788_v46, %v752_v45  ;;  %v288_v49 = vpop.f32.mrf.mxu0 }
  0xf1   :  { %v509_v50 = vpop.f32.mrf.mxu1 }
  0xf2   :  { %624 = vst [vmem:[#allocation2 + $0x80] sm:$0xff] %v592_v47  ;;  %v595_v51 = vadd.f32 %v1102_v38, %v518_v48  ;;  %v510_v52 = vadd.f32 %v509_v50, %v288_v49  ;;  %v755_v53 = vpop.f32.mrf.mxu0 }
  0xf3   :  { %v791_v54 = vpop.f32.mrf.mxu1 }
  0xf4   :  { %627 = vst [vmem:[#allocation2 + $0x98] sm:$0xff] %v595_v51  ;;  %v593_v55 = vadd.f32 %v1102_v38, %v510_v52  ;;  %v531_v56 = vadd.f32 %v791_v54, %v755_v53  ;;  %v301_v57 = vpop.f32.mrf.mxu0 }
  0xf5   :  { %v522_v58 = vpop.f32.mrf.mxu1 }
  0xf6   :  { %625 = vst [vmem:[#allocation2 + $0x88] sm:$0xff] %v593_v55  ;;  %v598_v59 = vadd.f32 %v1102_v38, %v531_v56  ;;  %v523_v60 = vadd.f32 %v522_v58, %v301_v57  ;;  %v756_v61 = vpop.f32.mrf.mxu0 }
  0xf7   :  { %v792_v62 = vpop.f32.mrf.mxu1 }
  0xf8   :  { %630 = vst [vmem:[#allocation2 + $0xb0] sm:$0xff] %v598_v59  ;;  %v596_v63 = vadd.f32 %v1102_v38, %v523_v60  ;;  %v534_v0 = vadd.f32 %v792_v62, %v756_v61  ;;  %v304_v1 = vpop.f32.mrf.mxu0 }
  0xf9   :  { %v525_v2 = vpop.f32.mrf.mxu1 }
  0xfa   :  { %628 = vst [vmem:[#allocation2 + $0xa0] sm:$0xff] %v596_v63  ;;  %v599_v3 = vadd.f32 %v1102_v38, %v534_v0  ;;  %v526_v4 = vadd.f32 %v525_v2, %v304_v1  ;;  %v759_v5 = vpop.f32.mrf.mxu0 }
  0xfb   :  { %v795_v6 = vpop.f32.mrf.mxu1 }
  0xfc   :  { %631 = vst [vmem:[#allocation2 + $0xb8] sm:$0xff] %v599_v3  ;;  %v597_v7 = vadd.f32 %v1102_v38, %v526_v4  ;;  %v547_v8 = vadd.f32 %v795_v6, %v759_v5  ;;  %v317_v9 = vpop.f32.mrf.mxu0 }
  0xfd   :  { %v538_v10 = vpop.f32.mrf.mxu1 }
  0xfe   :  { %629 = vst [vmem:[#allocation2 + $0xa8] sm:$0xff] %v597_v7  ;;  %v602_v11 = vadd.f32 %v1102_v38, %v547_v8  ;;  %v539_v12 = vadd.f32 %v538_v10, %v317_v9  ;;  %v760_v13 = vpop.f32.mrf.mxu0 }
  0xff   :  { %v796_v14 = vpop.f32.mrf.mxu1 }
 0x100   :  { %634 = vst [vmem:[#allocation2 + $0xd0] sm:$0xff] %v602_v11  ;;  %v600_v15 = vadd.f32 %v1102_v38, %v539_v12  ;;  %v550_v16 = vadd.f32 %v796_v14, %v760_v13  ;;  %v320_v17 = vpop.f32.mrf.mxu0 }
 0x101   :  { %v541_v18 = vpop.f32.mrf.mxu1 }
 0x102   :  { %632 = vst [vmem:[#allocation2 + $0xc0] sm:$0xff] %v600_v15  ;;  %v603_v19 = vadd.f32 %v1102_v38, %v550_v16  ;;  %v542_v20 = vadd.f32 %v541_v18, %v320_v17  ;;  %v763_v21 = vpop.f32.mrf.mxu0 }
 0x103   :  { %v799_v22 = vpop.f32.mrf.mxu1 }
 0x104   :  { %635 = vst [vmem:[#allocation2 + $0xd8] sm:$0xff] %v603_v19  ;;  %v601_v23 = vadd.f32 %v1102_v38, %v542_v20  ;;  %v563_v24 = vadd.f32 %v799_v22, %v763_v21  ;;  %v333_v25 = vpop.f32.mrf.mxu0 }
 0x105   :  { %v554_v26 = vpop.f32.mrf.mxu1 }
 0x106   :  { %633 = vst [vmem:[#allocation2 + $0xc8] sm:$0xff] %v601_v23  ;;  %v606_v27 = vadd.f32 %v1102_v38, %v563_v24  ;;  %v555_v28 = vadd.f32 %v554_v26, %v333_v25  ;;  %v764_v29 = vpop.f32.mrf.mxu0 }
 0x107   :  { %v800_v30 = vpop.f32.mrf.mxu1 }
 0x108   :  { %638 = vst [vmem:[#allocation2 + $0xf0] sm:$0xff] %v606_v27  ;;  %v604_v31 = vadd.f32 %v1102_v38, %v555_v28  ;;  %v566_v32 = vadd.f32 %v800_v30, %v764_v29  ;;  %v336_v33 = vpop.f32.mrf.mxu0 }
 0x109   :  { %v557_v34 = vpop.f32.mrf.mxu1 }
 0x10a   :  { %636 = vst [vmem:[#allocation2 + $0xe0] sm:$0xff] %v604_v31  ;;  %v607_v35 = vadd.f32 %v1102_v38, %v566_v32  ;;  %v558_v36 = vadd.f32 %v557_v34, %v336_v33 }
 0x10c   :  { %639 = vst [vmem:[#allocation2 + $0xf8] sm:$0xff] %v607_v35  ;;  %v605_v37 = vadd.f32 %v1102_v38, %v558_v36 }
 0x10e   :  { %637 = vst [vmem:[#allocation2 + $0xe8] sm:$0xff] %v605_v37 }
 0x10f   :  { %819 = shalt.err (!%p816_p4)
}
 0x110   :  { %s831_s21 = smov 128   ;;  %s832_s22 = smov 8  }
 0x111   :  { %651 = dma.vmem_to_hbm [thread:$0]  %s646_s4, 4096, %s1144_s5, [#allocation3], %s831_s21, %s831_s21, %s832_s22  }
 0x112   :  { %828 = dma.done.wait [#allocation3], 4096  }
 0x113   :  { %829 = vsyncadd [#allocation3], 4294963200 }
 0x114   :  { %655 = vsyncpa [#allocation3], 1 }

</bundles_post_ra>
